<compile_context>
chip_gen: v7x
topology: tpu7x:2x2x1
jax: 0.10.0
libtpu: 0.0.40
codegen_flags: <defaults>
</compile_context>

<pallas_src>
import jax
import jax.numpy as jnp
from jax.experimental import pallas as pl
from jax.experimental.pallas import tpu as pltpu

ENC_OUT = 1000            # logical encoder/pooler width (nn.Linear(1000, 1) input)
ENC_PAD = 1024            # lane-dense padded width (multiple of 128 and 256)
N_BLOCKS = 2              # hidden-dim split -> "parallel" axis (feeds 2nd TC on v7x)
TN = ENC_PAD // N_BLOCKS  # 512 columns per block (multiple of 256)
MAX_TK = 4096             # K tile rows: 4*tk*TN*2B = 16 MiB double-buffered weights


def _reward_kernel(x_ref, l_ref, w1a_ref, w1b_ref, b1_ref, w2_ref, b2_ref,
                   out_ref, acc_ref):
    # x:   (B_pad, tk)   bf16   flattened channel-0 of `inputs`, K block k
    # l:   (B_pad, tk)   bf16   flattened channel-0 of `label`,  K block k
    # w1a: (tk, TN)      bf16   encoder weight rows (x half), block (k, j)
    # w1b: (tk, TN)      bf16   encoder weight rows (l half), block (k, j)
    # b1:  (1, TN)       f32    encoder bias columns for block j
    # w2:  (1, TN)       f32    reward-head weight columns for block j
    # b2:  (1,)          f32    reward-head bias (SMEM scalar)
    # out: (B_pad, 128)  f32    partial reward for block j (lane-broadcast)
    # acc: (B_pad, TN)   f32    scratch accumulator, lives across k steps
    j = pl.program_id(0)                      # hidden-column block ("parallel")
    k = pl.program_id(1)                      # reduction block     ("arbitrary")

    @pl.when(k == 0)
    def _init():
        acc_ref[...] = jnp.zeros_like(acc_ref)

    # Encoder matmul with fused concat: x @ w1_top + l @ w1_bot, f32 accumulation.
    acc_ref[...] += jnp.dot(x_ref[...], w1a_ref[...],
                            preferred_element_type=jnp.float32)
    acc_ref[...] += jnp.dot(l_ref[...], w1b_ref[...],
                            preferred_element_type=jnp.float32)

    @pl.when(k == pl.num_programs(1) - 1)
    def _finalize():
        h = jnp.maximum(acc_ref[...] + b1_ref[...], 0.0)        # (B_pad, TN)
        # Reward head: N=1 matmul as VPU multiply + XLU lane reduction.
        # Padded hidden columns (1000:1024) are zero in w2 -> no contamination.
        r = jnp.sum(h * w2_ref[...], axis=-1, keepdims=True)    # (B_pad, 1)
        r = r + jnp.where(j == 0, b2_ref[0], 0.0)               # add bias once
        out_ref[...] = jnp.broadcast_to(r, out_ref.shape).astype(out_ref.dtype)


def reward_model_forward(inputs, label, params, *, tk=None):
    """inputs, label: (B, C, H, W) float32 (NCHW, like PyTorch). Returns (B, 1)."""
    w1, b1, w2_row, b2 = params               # w1: (2*HW, 1024) bf16
    B, _, H, W = inputs.shape
    HW = H * W

    # Channel-0 slice + flatten (the concat itself is fused into the kernel
    # by splitting w1 into two row blocks).
    x0 = inputs[:, 0, :, :].reshape(B, HW)
    l0 = label[:, 0, :, :].reshape(B, HW)

    # K tile: multiple of 128 lanes, capped for v7x's 64 MiB VMEM.
    if tk is None:
        tk = min(MAX_TK, 128 * pl.cdiv(HW, 128))
    assert tk % 128 == 0
    k_pad = tk * pl.cdiv(HW, tk)              # zero-padded K extent
    nk = k_pad // tk

    # Batch padded to a multiple of 16 sublanes (bf16 packs 16 rows per vreg).
    b_pad = 16 * pl.cdiv(B, 16)

    x0 = jnp.pad(x0, ((0, b_pad - B), (0, k_pad - HW))).astype(jnp.bfloat16)
    l0 = jnp.pad(l0, ((0, b_pad - B), (0, k_pad - HW))).astype(jnp.bfloat16)

    w1a = jnp.pad(w1[:HW], ((0, k_pad - HW), (0, 0)))   # (k_pad, 1024) bf16
    w1b = jnp.pad(w1[HW:], ((0, k_pad - HW), (0, 0)))   # (k_pad, 1024) bf16

    # VMEM footprint of the resident (double-buffered) tiles + headroom.
    tile_bytes = (
        2 * 2 * tk * TN * 2          # w1a, w1b blocks, 2-deep, bf16
        + 2 * 2 * b_pad * tk * 2     # x, l blocks, 2-deep, bf16
        + 2 * b_pad * 128 * 4        # output block, 2-deep, f32
        + 2 * 2 * TN * 4             # b1, w2 blocks, 2-deep, f32
        + b_pad * TN * 4             # accumulator scratch
    )
    vmem_limit = max(32 * 1024 * 1024, int(1.5 * tile_bytes) + (1 << 20))

    cost = pl.CostEstimate(
        flops=2 * b_pad * (2 * k_pad) * ENC_PAD + 2 * b_pad * ENC_PAD,
        transcendentals=0,
        bytes_accessed=(2 * k_pad * ENC_PAD * 2              # w1a + w1b (bf16)
                        + 2 * N_BLOCKS * b_pad * k_pad * 2   # x, l per j block
                        + b_pad * N_BLOCKS * 128 * 4         # output
                        + 2 * ENC_PAD * 4))                  # b1, w2

    grid_spec = pltpu.PrefetchScalarGridSpec(
        num_scalar_prefetch=0,
        grid=(N_BLOCKS, nk),                                  # reduction axis last
        in_specs=[
            pl.BlockSpec((b_pad, tk), lambda j, k: (0, k)),   # x0
            pl.BlockSpec((b_pad, tk), lambda j, k: (0, k)),   # l0
            pl.BlockSpec((tk, TN), lambda j, k: (k, j)),      # w1a row/col block
            pl.BlockSpec((tk, TN), lambda j, k: (k, j)),      # w1b row/col block
            pl.BlockSpec((1, TN), lambda j, k: (0, j)),       # b1 columns
            pl.BlockSpec((1, TN), lambda j, k: (0, j)),       # w2 columns
            pl.BlockSpec(memory_space=pltpu.MemorySpace.SMEM),  # b2 scalar
        ],
        out_specs=pl.BlockSpec((b_pad, 128), lambda j, k: (0, j)),
        scratch_shapes=[pltpu.VMEM((b_pad, TN), jnp.float32)],
    )

    out = pl.pallas_call(
        _reward_kernel,
        out_shape=jax.ShapeDtypeStruct((b_pad, N_BLOCKS * 128), jnp.float32),
        grid_spec=grid_spec,
        compiler_params=pltpu.CompilerParams(
            dimension_semantics=("parallel", "arbitrary"),
            vmem_limit_bytes=vmem_limit),
        cost_estimate=cost,
    )(x0, l0, w1a, w1b, b1, w2_row, b2)

    # Each hidden-column block wrote its partial reward (b2 included once on j=0).
    partials = out[:B].reshape(B, N_BLOCKS, 128)[:, :, 0]     # (B, N_BLOCKS)
    return jnp.sum(partials, axis=1, keepdims=True)           # (B, 1)


def init_params(key, in_features, enc_out=ENC_OUT, enc_pad=ENC_PAD):
    k1, k2, k3, k4 = jax.random.split(key, 4)
    # Synthetic encoder: Linear(in_features -> 1000), ReLU.
    w1 = jax.random.normal(k1, (in_features, enc_out), jnp.float32) * 0.02
    b1 = jax.random.normal(k2, (1, enc_out), jnp.float32) * 0.01
    # Reward head: nn.Linear(1000, 1), stored as a weight row (1, 1000).
    w2 = jax.random.normal(k3, (enc_out,), jnp.float32) * 0.02
    b2 = jax.random.normal(k4, (1,), jnp.float32) * 0.01

    # Zero-pad the hidden dim 1000 -> 1024 for lane-dense layout; zeros in the
    # padded w1 columns / b1 / w2 row keep the math exactly equivalent.
    pad = enc_pad - enc_out
    w1p = jnp.pad(w1, ((0, 0), (0, pad))).astype(jnp.bfloat16)   # bf16 weights
    b1p = jnp.pad(b1, ((0, 0), (0, pad)))                        # (1, 1024) f32
    w2p = jnp.pad(w2, (0, pad)).reshape(1, enc_pad)              # (1, 1024) f32
    return (w1p, b1p, w2p, b2)


if __name__ == "__main__":
    key = jax.random.PRNGKey(0)
    k_in, k_lab, k_par = jax.random.split(key, 3)

    B, C, H, W = 2, 4, 16, 16
    inputs = jax.random.normal(k_in, (B, C, H, W), jnp.float32)
    label = jax.random.normal(k_lab, (B, C, H, W), jnp.float32)

    params = init_params(k_par, in_features=2 * H * W)

    # tk=128 at this small size so the multi-step K reduction path is exercised
    # (grid = (2 hidden blocks, 2 K blocks)); production default is tk=4096.
    reward = reward_model_forward(inputs, label, params, tk=128)
    reward = jax.block_until_ready(reward)
    assert reward.shape == (B, 1)

    # Pure-JAX reference (same bf16 quantization of x / w1, f32 accumulation).
    w1, b1, w2_row, b2 = params
    HW = H * W
    xq = inputs[:, 0, :, :].reshape(B, HW).astype(jnp.bfloat16).astype(jnp.float32)
    lq = label[:, 0, :, :].reshape(B, HW).astype(jnp.bfloat16).astype(jnp.float32)
    w1a_f = w1[:HW].astype(jnp.float32)
    w1b_f = w1[HW:].astype(jnp.float32)
    ref_h = jnp.maximum(xq @ w1a_f + lq @ w1b_f + b1, 0.0)
    ref = jnp.sum(ref_h * w2_row, axis=-1, keepdims=True) + b2[0]

    assert jnp.allclose(reward, ref, atol=2e-3, rtol=2e-3), (
        jnp.max(jnp.abs(reward - ref)))

    print("KERNEL_OK")
</pallas_src>

<mosaic_0001>
module attributes {stable_mosaic.version = 11 : i64} {
  func.func @_reward_kernel(%arg0: i32, %arg1: i32, %arg2: memref<16x128xbf16, #tpu.memory_space<vmem>>, %arg3: memref<16x128xbf16, #tpu.memory_space<vmem>>, %arg4: memref<128x512xbf16, #tpu.memory_space<vmem>>, %arg5: memref<128x512xbf16, #tpu.memory_space<vmem>>, %arg6: memref<1x512xf32, #tpu.memory_space<vmem>>, %arg7: memref<1x512xf32, #tpu.memory_space<vmem>>, %arg8: memref<1xf32, #tpu.memory_space<smem>>, %arg9: memref<16x128xf32, #tpu.memory_space<vmem>>, %arg10: memref<16x512xf32, #tpu.memory_space<vmem>>) attributes {dimension_semantics = [#tpu.dimension_semantics<parallel>, #tpu.dimension_semantics<arbitrary>], iteration_bounds = array<i64: 2, 2>, scalar_prefetch = 0 : i64, scratch_operands = 1 : i64, tpu.core_type = #tpu.core_type<tc>, window_params = [{transform_indices = @transform_0, window_bounds = array<i64: 16, 128>}, {transform_indices = @transform_1, window_bounds = array<i64: 16, 128>}, {transform_indices = @transform_2, window_bounds = array<i64: 128, 512>}, {transform_indices = @transform_3, window_bounds = array<i64: 128, 512>}, {transform_indices = @transform_4, window_bounds = array<i64: 1, 512>}, {transform_indices = @transform_5, window_bounds = array<i64: 1, 512>}, {transform_indices = @transform_6, window_bounds = array<i64: 1>}, {transform_indices = @transform_7, window_bounds = array<i64: 16, 128>}]} {
    %c0_i32 = arith.constant 0 : i32
    %0 = arith.cmpi eq, %arg1, %c0_i32 : i32
    %1 = arith.extui %0 : i1 to i32
    %c0_i32_0 = arith.constant 0 : i32
    %2 = arith.cmpi ne, %1, %c0_i32_0 : i32
    scf.if %2 {
      %cst_18 = arith.constant 0.000000e+00 : f32
      %18 = vector.broadcast %cst_18 : f32 to vector<16x512xf32>
      %c0_19 = arith.constant 0 : index
      %c0_20 = arith.constant 0 : index
      %19 = vector.load %arg10[%c0_19, %c0_20] : memref<16x512xf32, #tpu.memory_space<vmem>>, vector<16x512xf32>
      tpu.vector_store %arg10[%c0_19, %c0_20], %18 {strides = array<i32>} : memref<16x512xf32, #tpu.memory_space<vmem>>, vector<16x512xf32>,
    } else {
    }
    %c0 = arith.constant 0 : index
    %c0_1 = arith.constant 0 : index
    %3 = vector.load %arg10[%c0, %c0_1] : memref<16x512xf32, #tpu.memory_space<vmem>>, vector<16x512xf32>
    %c0_2 = arith.constant 0 : index
    %c0_3 = arith.constant 0 : index
    %4 = vector.load %arg2[%c0_2, %c0_3] : memref<16x128xbf16, #tpu.memory_space<vmem>>, vector<16x128xbf16>
    %c0_4 = arith.constant 0 : index
    %c0_5 = arith.constant 0 : index
    %5 = vector.load %arg4[%c0_4, %c0_5] : memref<128x512xbf16, #tpu.memory_space<vmem>>, vector<128x512xbf16>
    %cst = arith.constant dense<0.000000e+00> : vector<16x512xf32>
    %6 = tpu.matmul %4, %5, %cst {dimension_numbers = #tpu.dot_dimension_numbers<[1], [0], [0], [1], [0, 0, 1, 1], [], []>} : vector<16x128xbf16>, vector<128x512xbf16>, vector<16x512xf32> -> vector<16x512xf32>
    %7 = arith.addf %3, %6 : vector<16x512xf32>
    %c0_6 = arith.constant 0 : index
    %c0_7 = arith.constant 0 : index
    %8 = vector.load %arg10[%c0_6, %c0_7] : memref<16x512xf32, #tpu.memory_space<vmem>>, vector<16x512xf32>
    tpu.vector_store %arg10[%c0_6, %c0_7], %7 {strides = array<i32>} : memref<16x512xf32, #tpu.memory_space<vmem>>, vector<16x512xf32>,
    %c0_8 = arith.constant 0 : index
    %c0_9 = arith.constant 0 : index
    %9 = vector.load %arg10[%c0_8, %c0_9] : memref<16x512xf32, #tpu.memory_space<vmem>>, vector<16x512xf32>
    %c0_10 = arith.constant 0 : index
    %c0_11 = arith.constant 0 : index
    %10 = vector.load %arg3[%c0_10, %c0_11] : memref<16x128xbf16, #tpu.memory_space<vmem>>, vector<16x128xbf16>
    %c0_12 = arith.constant 0 : index
    %c0_13 = arith.constant 0 : index
    %11 = vector.load %arg5[%c0_12, %c0_13] : memref<128x512xbf16, #tpu.memory_space<vmem>>, vector<128x512xbf16>
    %cst_14 = arith.constant dense<0.000000e+00> : vector<16x512xf32>
    %12 = tpu.matmul %10, %11, %cst_14 {dimension_numbers = #tpu.dot_dimension_numbers<[1], [0], [0], [1], [0, 0, 1, 1], [], []>} : vector<16x128xbf16>, vector<128x512xbf16>, vector<16x512xf32> -> vector<16x512xf32>
    %13 = arith.addf %9, %12 : vector<16x512xf32>
    %c0_15 = arith.constant 0 : index
    %c0_16 = arith.constant 0 : index
    %14 = vector.load %arg10[%c0_15, %c0_16] : memref<16x512xf32, #tpu.memory_space<vmem>>, vector<16x512xf32>
    tpu.vector_store %arg10[%c0_15, %c0_16], %13 {strides = array<i32>} : memref<16x512xf32, #tpu.memory_space<vmem>>, vector<16x512xf32>,
    %c1_i32 = arith.constant 1 : i32
    %15 = arith.cmpi eq, %arg1, %c1_i32 : i32
    %16 = arith.extui %15 : i1 to i32
    %c0_i32_17 = arith.constant 0 : i32
    %17 = arith.cmpi ne, %16, %c0_i32_17 : i32
    scf.if %17 {
      %c0_18 = arith.constant 0 : index
      %c0_19 = arith.constant 0 : index
      %18 = vector.load %arg10[%c0_18, %c0_19] : memref<16x512xf32, #tpu.memory_space<vmem>>, vector<16x512xf32>
      %c0_20 = arith.constant 0 : index
      %c0_21 = arith.constant 0 : index
      %19 = vector.load %arg6[%c0_20, %c0_21] : memref<1x512xf32, #tpu.memory_space<vmem>>, vector<1x512xf32>
      %20 = vector.broadcast %19 : vector<1x512xf32> to vector<16x512xf32>
      %21 = arith.addf %18, %20 : vector<16x512xf32>
      %cst_22 = arith.constant 0.000000e+00 : f32
      %22 = vector.broadcast %cst_22 : f32 to vector<16x512xf32>
      %23 = arith.maximumf %21, %22 : vector<16x512xf32>
      %c0_23 = arith.constant 0 : index
      %c0_24 = arith.constant 0 : index
      %24 = vector.load %arg7[%c0_23, %c0_24] : memref<1x512xf32, #tpu.memory_space<vmem>>, vector<1x512xf32>
      %25 = vector.broadcast %24 : vector<1x512xf32> to vector<16x512xf32>
      %26 = arith.mulf %23, %25 : vector<16x512xf32>
      %cst_25 = arith.constant dense<0.000000e+00> : vector<16xf32>
      %27 = vector.multi_reduction <add>, %26, %cst_25 [1] : vector<16x512xf32> to vector<16xf32>
      %28 = vector.shape_cast %27 : vector<16xf32> to vector<16x1xf32>
      %c0_i32_26 = arith.constant 0 : i32
      %29 = arith.cmpi eq, %arg0, %c0_i32_26 : i32
      %c0_27 = arith.constant 0 : index
      %30 = memref.load %arg8[%c0_27] : memref<1xf32, #tpu.memory_space<smem>>
      %cst_28 = arith.constant 0.000000e+00 : f32
      %31 = arith.select %29, %30, %cst_28 : f32
      %32 = vector.broadcast %31 : f32 to vector<16x1xf32>
      %33 = arith.addf %28, %32 : vector<16x1xf32>
      %34 = vector.shape_cast %33 : vector<16x1xf32> to vector<16x1xf32>
      %35 = vector.broadcast %34 : vector<16x1xf32> to vector<16x128xf32>
      %c0_29 = arith.constant 0 : index
      %c0_30 = arith.constant 0 : index
      %36 = vector.load %arg9[%c0_29, %c0_30] : memref<16x128xf32, #tpu.memory_space<vmem>>, vector<16x128xf32>
      tpu.vector_store %arg9[%c0_29, %c0_30], %35 {strides = array<i32>} : memref<16x128xf32, #tpu.memory_space<vmem>>, vector<16x128xf32>,
    } else {
    }
    return
  }
  func.func @transform_0(%arg0: i32, %arg1: i32) -> (i32, i32) {
    %c0_i32 = arith.constant 0 : i32
    %c0_i32_0 = arith.constant 0 : i32
    return %c0_i32, %arg1 : i32, i32
  }
  func.func @transform_1(%arg0: i32, %arg1: i32) -> (i32, i32) {
    %c0_i32 = arith.constant 0 : i32
    %c0_i32_0 = arith.constant 0 : i32
    return %c0_i32, %arg1 : i32, i32
  }
  func.func @transform_2(%arg0: i32, %arg1: i32) -> (i32, i32) {
    %c0_i32 = arith.constant 0 : i32
    return %arg1, %arg0 : i32, i32
  }
  func.func @transform_3(%arg0: i32, %arg1: i32) -> (i32, i32) {
    %c0_i32 = arith.constant 0 : i32
    return %arg1, %arg0 : i32, i32
  }
  func.func @transform_4(%arg0: i32, %arg1: i32) -> (i32, i32) {
    %c0_i32 = arith.constant 0 : i32
    %c0_i32_0 = arith.constant 0 : i32
    return %c0_i32, %arg0 : i32, i32
  }
  func.func @transform_5(%arg0: i32, %arg1: i32) -> (i32, i32) {
    %c0_i32 = arith.constant 0 : i32
    %c0_i32_0 = arith.constant 0 : i32
    return %c0_i32, %arg0 : i32, i32
  }
  func.func @transform_6(%arg0: i32, %arg1: i32) -> i32 {
    %c0_i32 = arith.constant 0 : i32
    %c0_i32_0 = arith.constant 0 : i32
    return %c0_i32 : i32
  }
  func.func @transform_7(%arg0: i32, %arg1: i32) -> (i32, i32) {
    %c0_i32 = arith.constant 0 : i32
    %c0_i32_0 = arith.constant 0 : i32
    return %c0_i32, %arg0 : i32, i32
  }
}

</mosaic_0001>

<bundles_post_ra>
// kernel: tpu_custom_call.1
= control target key start
LH: loop header
LB: loop body
LE: loop exit
PB: predicated region body
PF: predicated region fallthrough
CT: control target
= control target key end

     0   :  { %s2688_s0 = inlined_call_operand.hbm [shape: bf16[16,256], index: 0, kind: input, shape index: {}]   ;;  %s2689_s1 = inlined_call_operand.hbm [shape: bf16[16,256], index: 1, kind: input, shape index: {}]   ;;  %s2690_s2 = inlined_call_operand.hbm [shape: bf16[256,1024], index: 2, kind: input, shape index: {}]   ;;  %s2691_s3 = inlined_call_operand.hbm [shape: bf16[256,1024], index: 3, kind: input, shape index: {}]   ;;  %s2692_s4 = inlined_call_operand.vmem [shape: f32[1,1024], index: 4, kind: input, shape index: {}]   ;;  %s2693_s5 = inlined_call_operand.vmem [shape: f32[1,1024], index: 5, kind: input, shape index: {}]   ;;  %s2694_s6 = inlined_call_operand.<no memory space> [shape: f32[1], index: 6, kind: input, shape index: {}]   ;;  %s2695_s7 = inlined_call_operand.hbm [shape: f32[16,256], index: 7, kind: output, shape index: {}]  }
   0x1   :  { %2717 = sst [smem:[#allocation29_spill]] %s2688_s0 }
   0x2   :  { %2718 = sst [smem:[#allocation30_spill]] %s2689_s1 }
   0x3   :  { %2719 = sst [smem:[#allocation31_spill]] %s2690_s2 }
   0x4   :  { %2720 = sst [smem:[#allocation32_spill]] %s2692_s4 }
   0x5   :  { %2721 = sst [smem:[#allocation33_spill]] %s2693_s5 }
   0x6   :  { %2722 = sst [smem:[#allocation34_spill]] %s2695_s7 }
   0x7   :  { %12 = sst [smem:[#allocation3]] %s2694_s6 }
   0x8   :  { %13 = vsyncpa [#allocation5], 0 }
   0x9   :  { %15 = vsyncpa [#allocation5 + $0x1], 0 }
   0xa   :  { %16 = vsyncpa [#allocation8], 0 }
   0xb   :  { %18 = vsyncpa [#allocation8 + $0x1], 0 }
   0xc   :  { %19 = vsyncpa [#allocation11], 0 }
   0xd   :  { %21 = vsyncpa [#allocation11 + $0x1], 0 }
   0xe   :  { %22 = vsyncpa [#allocation6], 0 }
   0xf   :  { %24 = vsyncpa [#allocation6 + $0x1], 0  ;;  %s2116_s26 = smov 0   ;;  %s2118_s27 = smov 0  }
  0x10   :  { %s2120_s28 = smov 0   ;;  %s2122_s29 = smov 0  }
  0x11   :  { %s2124_s30 = smov 0   ;;  %s2126_s8 = smov 0  }
  0x12   :  { %s2128_s6 = smov 0   ;;  %s2130_s9 = smov 0  }
  0x13   :  { %s2132_s10 = smov 0   ;;  %s2134_s11 = smov 0  }
  0x14   :  { %s2136_s12 = smov 0   ;;  %s2138_s13 = smov 0  }
  0x15   :  { %s2140_s14 = smov 0   ;;  %s2142_s15 = smov 0  }
  0x16 LB: > { %2723 = sst [smem:[#allocation18_spill]] %s2003_s26  ;;  %s2185_s16 = sadd.s32 4294967295, %s2055_s15   ;;  %s2055_s15 = sphi %s2142_s15, %s30_s15   ;;  %s2051_s14 = sphi %s2140_s14, %s2781_s14   ;;  %s2047_s13 = sphi %s2138_s13, %s2780_s13   ;;  %s2043_s12 = sphi %s2136_s12, %s2779_s12   ;;  %s2039_s11 = sphi %s2134_s11, %s2792_s11   ;;  %s2035_s10 = sphi %s2132_s10, %s2791_s10   ;;  %s2031_s9 = sphi %s2130_s9, %s2790_s9   ;;  %s2027_s6 = sphi %s2128_s6, %s2789_s6   ;;  %s2023_s8 = sphi %s2126_s8, %s2788_s8   ;;  %s2019_s30 = sphi %s2124_s30, %s2787_s30   ;;  %s2015_s29 = sphi %s2122_s29, %s2786_s29   ;;  %s2011_s28 = sphi %s2120_s28, %s2785_s28   ;;  %s2007_s27 = sphi %s2118_s27, %s2784_s27   ;;  %s2003_s26 = sphi %s2116_s26, %s2783_s26  }
  0x17   : > { %2724 = sst [smem:[#allocation19_spill]] %s2011_s28  ;;  %s1396_s17 = sadd.s32 4294967294, %s2055_s15  }
  0x18   : > { %2725 = sst [smem:[#allocation20_spill]] %s2039_s11  ;;  %s39_s18 = sadd.s32 1, %s2047_s13 }
  0x19   : > { %2726 = sst [smem:[#allocation21_spill]] %s2047_s13  ;;  %s42_s19 = sadd.s32 1, %s2051_s14 }
  0x1a   : > { %2727 = sst [smem:[#allocation22_spill]] %s2051_s14  ;;  %p40_p0 = scmp.ge.s32.totalorder %s39_s18, 2 }
  0x1b   : > { %s49_s20 = sadd.s32 1, %s2035_s10  ;;  %p56_p1 = scmp.ne.s32.totalorder %s2035_s10, %s2031_s9 }
  0x1c   : > { %p2708_p2 = scmp.eq.s32.totalorder %s2055_s15, 0  ;;  %s2794_s18 = smov (%p40_p0, %s39_s18), 0 }
  0x1d   : > { %2728 = sst [smem:[#allocation23_spill]] %s2794_s18  ;;  %s2796_s19 = smov (!%p40_p0, %s42_s19), %s2051_s14 }
  0x1e   : > { %s46_s21 = ssub.s32 %s2047_s13, %s2794_s18  ;;  %p2201_p3 = por %p2708_p2, %p56_p1 }
  0x1f   : > { %p44_p4 = scmp.ge.s32.totalorder %s2796_s19, 2  ;;  %p47_p5 = scmp.eq.s32.totalorder %s46_s21, 0 }
  0x20   : > { %p62_p6 = scmp.ne.s32.totalorder %s2031_s9, %s2027_s6  ;;  %p2707_p7 = scmp.eq.s32.totalorder %s2185_s16, 0 }
  0x21   : > { %s2798_s19 = smov (%p44_p4, %s2796_s19), 0  ;;  %p240_p11 = scmp.ne.s32.totalorder %s2011_s28, %s2007_s27 }
  0x22   : > { %2730 = sst [smem:[#allocation24_spill]] %s2798_s19  ;;  %p2214_p8 = por %p2707_p7, %p62_p6 }
  0x23   : > { %s2210_s23 = scalar_select %p47_p5, %s2035_s10, %s49_s20  }
  0x24   : > { %s2732_s24 = scalar_select %p2214_p8, 1, 0 }
  0x25   : > { %2731 = sst [smem:[#allocation25_spill]] %s2210_s23  ;;  %s99_s25 = ssub.s32 %s2051_s14, %s2798_s19 }
  0x26   : > { %s100_s18 = sor.u32 %s99_s25, %s46_s21  ;;  %p228_p9 = scmp.eq.s32.totalorder %s99_s25, 0 }
  0x27   : > { %p2220_p10 = scmp.eq.s32.totalorder %s100_s18, 0  ;;  %s230_s20 = sadd.s32 1, %s2011_s28 }
  0x28   : > { %s2226_s23 = scalar_select %p228_p9, %s2011_s28, %s230_s20  }
  0x29   : > { %p241_p12 = scmp.eq.s32.totalorder %s2185_s16, 3  ;;  %p246_p13 = scmp.ne.s32.totalorder %s2007_s27, %s2003_s26 }
  0x2a   : > { %2734 = sst [smem:[#allocation26_spill]] %s2226_s23  ;;  %p247_p0 = scmp.eq.s32.totalorder %s1396_s17, 3 }
  0x2b   : > { %p2233_p1 = por %p241_p12, %p240_p11  ;;  %p2706_p5 = scmp.lt.s32.totalorder %s2055_s15, 4 }
  0x2c   : > { %p2237_p4 = por %p247_p0, %p246_p13  ;;  %s2701_s18 = sand.u32 1, %s2035_s10  }
  0x2d   : > { %s2735_s19 = scalar_select %p2233_p1, 1, 0 }
  0x2e   : > { %s2737_s21 = scalar_select %p2237_p4, 1, 0 }
  0x2f   : > { %2736 = sst [smem:[#allocation27_spill]] %s2735_s19  ;;  %s2705_s25 = sshll.u32 %s2047_s13, 6 }
  0x30   : > { %2738 = sst [smem:[#allocation28_spill]] %s2737_s21  ;;  %s2246_s20 = sshll.u32 %s2701_s18, 3 }
  0x31   : > { %p2252_p6 = pnand %p2706_p5, %p2201_p3  ;;  %s290_s17 = sand.u32 1, %s2055_s15  }
  0x32   : > { %s2740_s1 = sld [smem:[#allocation30_spill]]  ;;  %s294_s22 = scalar_lea.vmem [#allocation7], %s2246_s20 }
  0x33   : > { %s300_s18 = sshll.u32 %s294_s22, 4  ;;  %s2269_s7 = scalar_lea.sflag [#allocation8], %s290_s17  ;;  %s2266_s18 = int_to_ptr.vmem [resolvable:$true] %s300_s18 }
  0x34   : > { %p1779_p12 = pneg %p2252_p6 }
  0x38   : > { %s2262_s21 = scalar_lea.hbm %s2740_s1, %s2705_s25  ;;  %s1782_s25 = scalar_lea.hbm %s2740_s1, 256 }
  0x39   : > { %s1777_s19 = scalar_lea.hbm %s2262_s21, 128  ;;  %p1783_p5 = scmp.lt.u32.totalorder %s2262_s21, %s2740_s1 }
  0x3a   : > { %p1778_p11 = scmp.ne.s32.totalorder %s2262_s21, %s1777_s19  ;;  %p1784_p7 = scmp.lt.u32.totalorder %s1782_s25, %s1777_s19 }
  0x3b   : > { %p1786_p9 = scmp.lt.u32.totalorder %s1777_s19, %s2262_s21 }
  0x3c   : > { %p1780_p13 = pnand %p1779_p12, %p1778_p11  ;;  %p1785_p2 = por %p1784_p7, %p1783_p5 }
  0x3e   : > { %p1781_p0 = pneg %p1780_p13  ;;  %p1787_p3 = por %p1786_p9, %p1785_p2 }
  0x40   : > { %p1788_p4 = pnand %p1787_p3, %p1781_p0 }
  0x42   : > { %1791 = shalt.err (!%p1788_p4)
}
  0x43   : > { %s1792_s17 = scalar_lea.vmem %s2266_s18, 128  ;;  %s2057_s26 = smov [#allocation7]  }
  0x44   : > { %p1793_p11 = scmp.ne.s32.totalorder %s2266_s18, %s1792_s17  ;;  %s1797_s28 = sshll.u32 %s2057_s26, 4  ;;  %s1798_s28 = int_to_ptr.vmem [resolvable:$false] %s1797_s28 }
  0x45   : > { %s1799_s11 = scalar_lea.vmem %s1798_s28, 256  ;;  %p1800_p8 = scmp.lt.s32.totalorder %s2266_s18, %s1798_s28 }
  0x46   : > { %p1795_p13 = pnand %p1793_p11, %p1779_p12  ;;  %p1801_p7 = scmp.lt.s32.totalorder %s1799_s11, %s1792_s17 }
  0x48   : > { %p1796_p1 = pneg %p1795_p13  ;;  %p1802_p5 = por %p1801_p7, %p1800_p8 }
  0x4a   : > { %p1803_p2 = pnand %p1802_p5, %p1796_p1 }
  0x4c   : > { %1806 = shalt.err (!%p1803_p2)
}
  0x4d   : > { %s2711_s19 = smov 128   ;;  %s2712_s25 = smov 64  }
  0x4e   : > { %s2713_s22 = smov 4   ;;  %p2741_p8 = scmp.lt.s32.totalorder %s2055_s15, 5 }
  0x4f   : > { %1543 = dma.hbm_to_vmem [thread:$0]  (!%p2252_p6), %s2262_s21, 128, %s2266_s18, %s2269_s7, %s2711_s19, %s2712_s25, %s2713_s22  }
  0x50   : > { %p2742_p1 = scmp.ge.s32.totalorder %s2055_s15, 1  ;;  %s2744_s26 = sshll.u32 %s2047_s13, 6 }
  0x51   : > { %s2745_s0 = sld [smem:[#allocation29_spill]]  ;;  %s274_s5 = scalar_lea.vmem [#allocation4], %s2246_s20 }
  0x52   : > { %p2304_p4 = pnand %p2742_p1, %p2741_p8  ;;  %s280_s4 = sshll.u32 %s274_s5, 4  ;;  %s2316_s4 = int_to_ptr.vmem [resolvable:$true] %s280_s4 }
  0x53   : > { %s2746_s21 = sand.u32 1, %s2035_s10  }
  0x54   : > { %s2743_s17 = scalar_select %p2304_p4, 1, 0 }
  0x55   : > { %s2320_s18 = scalar_lea.sflag [#allocation5], %s2746_s21 }
  0x57   : > { %s2313_s1 = scalar_lea.hbm %s2745_s0, %s2744_s26  ;;  %s1812_s11 = scalar_lea.hbm %s2745_s0, 256 }
  0x58   : > { %s1807_s19 = scalar_lea.hbm %s2313_s1, 128  ;;  %p1813_p11 = scmp.lt.u32.totalorder %s2313_s1, %s2745_s0 }
  0x59   : > { %p1808_p9 = scmp.ne.s32.totalorder %s2313_s1, %s1807_s19  ;;  %p1814_p13 = scmp.lt.u32.totalorder %s1812_s11, %s1807_s19 }
  0x5a   : > { %p1816_p5 = scmp.lt.u32.totalorder %s1807_s19, %s2313_s1 }
  0x5b   : > { %p1810_p3 = pnand %p1808_p9, %p1779_p12  ;;  %p1815_p7 = por %p1814_p13, %p1813_p11 }
  0x5d   : > { %p1811_p0 = pneg %p1810_p3  ;;  %p1817_p2 = por %p1816_p5, %p1815_p7 }
  0x5f   : > { %p1818_p8 = pnand %p1817_p2, %p1811_p0 }
  0x61   : > { %1821 = shalt.err (!%p1818_p8)
}
  0x62   : > { %s1822_s5 = scalar_lea.vmem %s2316_s4, 128  ;;  %s2061_s20 = smov [#allocation4]  }
  0x63   : > { %p1823_p1 = scmp.ne.s32.totalorder %s2316_s4, %s1822_s5  ;;  %s1827_s21 = sshll.u32 %s2061_s20, 4  ;;  %s1828_s21 = int_to_ptr.vmem [resolvable:$false] %s1827_s21 }
  0x64   : > { %s1829_s25 = scalar_lea.vmem %s1828_s21, 256  ;;  %p1830_p4 = scmp.lt.s32.totalorder %s2316_s4, %s1828_s21 }
  0x65   : > { %p1825_p9 = pnand %p1823_p1, %p1779_p12  ;;  %p1831_p11 = scmp.lt.s32.totalorder %s1829_s25, %s1822_s5 }
  0x67   : > { %p1826_p3 = pneg %p1825_p9  ;;  %p1832_p13 = por %p1831_p11, %p1830_p4 }
  0x69   : > { %p1833_p7 = pnand %p1832_p13, %p1826_p3 }
  0x6b   : > { %1836 = shalt.err (!%p1833_p7)
}
  0x6c   : > { %s2747_s19 = smov 4   ;;  %s2748_s22 = smov 64  }
  0x6d   : > { %s2749_s28 = smov 128   ;;  %s103_s23 = sadd.s32 1, %s2023_s8 }
  0x6e   : > { %1540 = dma.hbm_to_vmem [thread:$0]  (!%p2252_p6), %s2313_s1, 128, %s2316_s4, %s2320_s18, %s2749_s28, %s2748_s22, %s2747_s19  }
  0x6f   : > { %p110_p12 = scmp.ne.s32.totalorder %s2023_s8, %s2019_s30  ;;  %p2750_p4 = scmp.eq.s32.totalorder %s2055_s15, 0 }
  0x70   : > { %s2355_s26 = scalar_select %p2220_p10, %s2023_s8, %s103_s23  }
  0x71   : > { %p2359_p0 = por %p110_p12, %p2750_p4  ;;  %p116_p5 = scmp.ne.s32.totalorder %s2019_s30, %s2015_s29 }
  0x72   : > { %s2714_s5 = sand.u32 1, %s2023_s8   ;;  %s1405_s20 = sshll.u32 %s2051_s14, 2 }
  0x73   : > { %p2752_p2 = scmp.eq.s32.totalorder %s2185_s16, 0  ;;  %s2375_s1 = sshll.u32 %s2714_s5, 8 }
  0x74   : > { %s1493_s4 = sshll.u32 %s2047_s13, 7  ;;  %s314_s18 = scalar_lea.vmem [#allocation9], %s2375_s1 }
  0x75   : > { %p2369_p8 = por %p116_p5, %p2752_p2  ;;  %s2378_s6 = sadd.s32 %s1493_s4, %s1405_s20 }
  0x76   : > { %s324_s25 = sshll.u32 %s314_s18, 4  ;;  %s1407_s19 = sshll.u32 %s2378_s6, 6  ;;  %s2382_s25 = int_to_ptr.vmem [resolvable:$true] %s324_s25 }
  0x77   : > { %s2754_s2 = sld [smem:[#allocation31_spill]]  ;;  %p2755_p10 = scmp.lt.s32.totalorder %s2055_s15, 4 }
  0x79   : > { %p2395_p6 = pnand %p2755_p10, %p2359_p0 }
  0x7b   : > { %p1839_p9 = pneg %p2395_p6 }
  0x7d   : > { %s2389_s28 = scalar_lea.hbm %s2754_s2, %s1407_s19  ;;  %s1842_s18 = scalar_lea.hbm %s2754_s2, 16384 }
  0x7e   : > { %s1837_s20 = scalar_lea.hbm %s2389_s28, 4096  ;;  %p1843_p13 = scmp.lt.u32.totalorder %s2389_s28, %s2754_s2 }
  0x7f   : > { %p1838_p1 = scmp.ne.s32.totalorder %s2389_s28, %s1837_s20  ;;  %p1844_p7 = scmp.lt.u32.totalorder %s1842_s18, %s1837_s20 }
  0x80   : > { %p1846_p4 = scmp.lt.u32.totalorder %s1837_s20, %s2389_s28 }
  0x81   : > { %p1840_p3 = pnand %p1839_p9, %p1838_p1  ;;  %p1845_p12 = por %p1844_p7, %p1843_p13 }
  0x83   : > { %p1841_p11 = pneg %p1840_p3  ;;  %p1847_p0 = por %p1846_p4, %p1845_p12 }
  0x85   : > { %p1848_p5 = pnand %p1847_p0, %p1841_p11 }
  0x87   : > { %1851 = shalt.err (!%p1848_p5)
}
  0x88   : > { %s1852_s5 = scalar_lea.vmem %s2382_s25, 4096  ;;  %s2062_s11 = smov [#allocation9]  }
  0x89   : > { %p1853_p2 = scmp.ne.s32.totalorder %s2382_s25, %s1852_s5  ;;  %s1857_s4 = sshll.u32 %s2062_s11, 4  ;;  %s1858_s4 = int_to_ptr.vmem [resolvable:$false] %s1857_s4 }
  0x8a   : > { %s1859_s29 = scalar_lea.vmem %s1858_s4, 8192  ;;  %p1860_p3 = scmp.lt.s32.totalorder %s2382_s25, %s1858_s4 }
  0x8b   : > { %p1855_p10 = pnand %p1853_p2, %p1839_p9  ;;  %p1861_p13 = scmp.lt.s32.totalorder %s1859_s29, %s1852_s5 }
  0x8d   : > { %p1856_p1 = pneg %p1855_p10  ;;  %p1862_p7 = por %p1861_p13, %p1860_p3 }
  0x8f   : > { %p1863_p12 = pnand %p1862_p7, %p1856_p1 }
  0x91   : > { %1866 = shalt.err (!%p1863_p12)
}
  0x92   : > { %s2063_s20 = smov 512   ;;  %s2064_s18 = smov 256  }
  0x93   : > { %s2065_s22 = smov 16   ;;  %s2433_s4 = scalar_lea.hbm %s2691_s3, %s1407_s19 }
  0x94   : > { %1546 = dma.hbm_to_vmem [thread:$0]  (!%p2395_p6), %s2389_s28, 4096, %s2382_s25, %s2269_s7, %s2063_s20, %s2064_s18, %s2065_s22  }
  0x95   : > { %s338_s29 = scalar_lea.vmem [#allocation10], %s2375_s1  ;;  %s2757_s2 = sand.u32 1, %s2023_s8  }
  0x96   : > { %s348_s0 = sshll.u32 %s338_s29, 4  ;;  %s2440_s14 = scalar_lea.sflag [#allocation11], %s2757_s2  ;;  %s2436_s0 = int_to_ptr.vmem [resolvable:$true] %s348_s0 }
  0x97   : > { %s1867_s13 = scalar_lea.hbm %s2433_s4, 4096  ;;  %s1872_s25 = scalar_lea.hbm %s2691_s3, 16384 }
  0x98   : > { %p1868_p11 = scmp.ne.s32.totalorder %s2433_s4, %s1867_s13  ;;  %p1873_p5 = scmp.lt.u32.totalorder %s2433_s4, %s2691_s3 }
  0x99   : > { %p1874_p2 = scmp.lt.u32.totalorder %s1872_s25, %s1867_s13  ;;  %p1876_p1 = scmp.lt.u32.totalorder %s1867_s13, %s2433_s4 }
  0x9a   : > { %p1870_p4 = pnand %p1868_p11, %p1839_p9 }
  0x9b   : > { %p1875_p10 = por %p1874_p2, %p1873_p5 }
  0x9c   : > { %p1871_p0 = pneg %p1870_p4 }
  0x9d   : > { %p1877_p3 = por %p1876_p1, %p1875_p10 }
  0x9f   : > { %p1878_p13 = pnand %p1877_p3, %p1871_p0 }
  0xa1   : > { %1881 = shalt.err (!%p1878_p13)
}
  0xa2   : > { %s1882_s2 = scalar_lea.vmem %s2436_s0, 4096  ;;  %s2066_s1 = smov [#allocation10]  }
  0xa3   : > { %p1883_p7 = scmp.ne.s32.totalorder %s2436_s0, %s1882_s2  ;;  %s1887_s5 = sshll.u32 %s2066_s1, 4  ;;  %s1888_s5 = int_to_ptr.vmem [resolvable:$false] %s1887_s5 }
  0xa4   : > { %s1889_s11 = scalar_lea.vmem %s1888_s5, 8192  ;;  %p1890_p4 = scmp.lt.s32.totalorder %s2436_s0, %s1888_s5 }
  0xa5   : > { %p1885_p12 = pnand %p1883_p7, %p1839_p9  ;;  %p1891_p5 = scmp.lt.s32.totalorder %s1889_s11, %s1882_s2 }
  0xa7   : > { %p1886_p11 = pneg %p1885_p12  ;;  %p1892_p2 = por %p1891_p5, %p1890_p4 }
  0xa9   : > { %p1893_p10 = pnand %p1892_p2, %p1886_p11 }
  0xab   : > { %1896 = shalt.err (!%p1893_p10)
}
  0xac   : > { %1549 = dma.hbm_to_vmem [thread:$0]  (!%p2395_p6), %s2433_s4, 4096, %s2436_s0, %s2440_s14, %s2063_s20, %s2064_s18, %s2065_s22  }
  0xad   : > { %p2758_p9 = scmp.ne.s32.totalorder %s2743_s17, 0 }
  0xae   : > { %s378_s13 = sand.u32 (!%p2758_p9), 1, %s2031_s9   ;;  %p2759_p0 = scmp.ne.s32.totalorder (!%p2758_p9), %s2732_s24, 0 }
  0xaf   : > { %376 = sbr.rel (%p2758_p9) target bundleno = 690 (0x2b2), region = 48  ;;  %s2472_s29 = sshll.u32 (!%p2758_p9), %s378_s13, 3 }
  0xb0   : > { %s379_s7 = scalar_lea.sflag (!%p2758_p9), [#allocation5], %s378_s13  ;;  %s382_s6 = scalar_lea.vmem (!%p2758_p9), [#allocation4], %s2472_s29 }
  0xb6   : > { %1982 = dma.done.wait (%p2759_p0), %s379_s7, 128  }
  0xb7   : > { %1984 = vsyncadd (%p2759_p0), %s379_s7, 4294967168  ;;  %s387_s0 = sand.u32 1, %s2185_s16   ;;  %s391_s17 = scalar_lea.vmem [#allocation7], %s2472_s29 }
  0xb8   : > { %s388_s14 = scalar_lea.sflag [#allocation8], %s387_s0 }
  0xb9   : > { %1986 = dma.done.wait (%p2759_p0), %s388_s14, 128  }
  0xba   : > { %1988 = vsyncadd (%p2759_p0), %s388_s14, 4294967168  ;;  %s398_s23 = sand.u32 1, %s2019_s30  }
  0xbb   : > { %s1416_s20 = sshll.u32 %s398_s23, 8 }
  0xbc   : > { %s2486_s18 = scalar_lea.vmem [#allocation9], %s1416_s20 }
  0xbd   : > { %1990 = dma.done.wait (%p2369_p8), %s388_s14, 4096  }
  0xbe   : > { %1992 = vsyncadd (%p2369_p8), %s388_s14, 4294963200  ;;  %s406_s16 = scalar_lea.sflag [#allocation11], %s398_s23  ;;  %s2492_s22 = scalar_lea.vmem [#allocation10], %s1416_s20 }
  0xbf   : > { %1994 = dma.done.wait (%p2369_p8), %s406_s16, 4096  }
  0xc0   : > { %1996 = vsyncadd (%p2369_p8), %s406_s16, 4294963200  ;;  %s460_s24 = sand.u32 1, %s2007_s27   ;;  %s1419_s4 = sshll.u32 %s2043_s12, 2 }
  0xc1   : > { %s1418_s25 = sshll.u32 %s460_s24, 4  ;;  %p468_p6 = scmp.lt.s32.totalorder %s1419_s4, 7 }
  0xc2   : > { %s2760_s2 = sld [smem:[#allocation32_spill]]  ;;  %s2761_s21 = sld [smem:[#allocation33_spill]] }
  0xc3   : > { %s2800_s4 = smov (!%p468_p6, %s1419_s4), 7  ;;  %s2512_s7 = scalar_lea.vmem [#allocation12], %s1418_s25 }
  0xc4   : > { %s2762_s0 = sld [smem:[#allocation20_spill]] }
  0xc8   : > { %s470_s1 = scalar_lea.vmem %s2760_s2, %s2800_s4  ;;  %s475_s13 = scalar_lea.vmem %s2761_s21, %s2800_s4 }
  0xca   : > { %p1421_p8 = scmp.ne.s32.totalorder %s2762_s0, 0 }
  0xcb   : > { %v2067_v0 = vmov (!%p1421_p8), 0.0  }
  0xcc   : > { %481 = sbr.rel (%p1421_p8) target bundleno = 211 (0xd3), region = 68  ;;  %482 = vst [vmem:[#allocation2] sm:$0xff] (!%p1421_p8), %v2067_v0  ;;  %483 = vst [vmem:[#allocation2 + $0x8] sm:$0xff] (!%p1421_p8), %v2067_v0 }
  0xcd   : > { %484 = vst [vmem:[#allocation2 + $0x10] sm:$0xff] (!%p1421_p8), %v2067_v0  ;;  %485 = vst [vmem:[#allocation2 + $0x18] sm:$0xff] (!%p1421_p8), %v2067_v0 }
  0xce   : > { %486 = vst [vmem:[#allocation2 + $0x20] sm:$0xff] (!%p1421_p8), %v2067_v0  ;;  %487 = vst [vmem:[#allocation2 + $0x28] sm:$0xff] (!%p1421_p8), %v2067_v0 }
  0xcf   : > { %488 = vst [vmem:[#allocation2 + $0x30] sm:$0xff] (!%p1421_p8), %v2067_v0  ;;  %489 = vst [vmem:[#allocation2 + $0x38] sm:$0xff] (!%p1421_p8), %v2067_v0 }
  0xd3 PF: > { %v1679_v1 = vld [vmem:[%s2486_s18 + $0x4] ss:$16 sps:$4 sm:$0xff]   ;;  %v1681_v2 = vld [vmem:[%s2486_s18 + $0xc] ss:$16 sps:$4 sm:$0xff]   ;;  %v2068_v3 = vmov 0   ;;  %s2763_s29 = sld [smem:[#allocation20_spill]] }
  0xd4   : > { %730 = vmatprep.mubr.bf16.mxu0 %v2068_v3  ;;  %773 = vmatprep.mubr.bf16.mxu1 %v2068_v3  ;;  %v1683_v4 = vld [vmem:[%s2486_s18] ss:$16 sps:$4 sm:$0xff]   ;;  %v1684_v5 = vld [vmem:[%s2486_s18 + $0x8] ss:$16 sps:$4 sm:$0xff]   ;;  %v1685_v6 = vld [vmem:[%s2486_s18 + $0x24] ss:$16 sps:$4 sm:$0xff]  }
  0xd5   : > { %698 = vmatprep.subr.bf16.mxu0 %v1679_v1  ;;  %741 = vmatprep.subr.bf16.mxu1 %v1681_v2  ;;  %v1687_v7 = vld [vmem:[%s2486_s18 + $0x2c] ss:$16 sps:$4 sm:$0xff]   ;;  %v1689_v8 = vld [vmem:[%s2486_s18 + $0x20] ss:$16 sps:$4 sm:$0xff]   ;;  %v1690_v9 = vld [vmem:[%s2486_s18 + $0x28] ss:$16 sps:$4 sm:$0xff]  }
  0xd6   : > { %699 = vmatpush1.bf16.msra.mxu0 %v1683_v4  ;;  %742 = vmatpush1.bf16.msra.mxu1 %v1684_v5  ;;  %v1691_v10 = vld [vmem:[%s2486_s18 + $0x44] ss:$16 sps:$4 sm:$0xff]   ;;  %v1693_v11 = vld [vmem:[%s2486_s18 + $0x4c] ss:$16 sps:$4 sm:$0xff]   ;;  %v1695_v12 = vld [vmem:[%s2486_s18 + $0x40] ss:$16 sps:$4 sm:$0xff]  }
  0xd7   : > { %700 = vmatprep.subr.bf16.mxu0 %v1685_v6  ;;  %743 = vmatprep.subr.bf16.mxu1 %v1687_v7  ;;  %v1696_v13 = vld [vmem:[%s2486_s18 + $0x48] ss:$16 sps:$4 sm:$0xff]   ;;  %v1697_v14 = vld [vmem:[%s2486_s18 + $0x64] ss:$16 sps:$4 sm:$0xff]   ;;  %v1699_v15 = vld [vmem:[%s2486_s18 + $0x6c] ss:$16 sps:$4 sm:$0xff]  }
  0xd8   : > { %v1701_v16 = vld [vmem:[%s2486_s18 + $0x60] ss:$16 sps:$4 sm:$0xff]   ;;  %v1702_v17 = vld [vmem:[%s2486_s18 + $0x68] ss:$16 sps:$4 sm:$0xff]   ;;  %v1703_v18 = vld [vmem:[%s2486_s18 + $0x84] ss:$16 sps:$4 sm:$0xff]  }
  0xd9   : > { %v1705_v19 = vld [vmem:[%s2486_s18 + $0x8c] ss:$16 sps:$4 sm:$0xff]   ;;  %v1707_v20 = vld [vmem:[%s2486_s18 + $0x80] ss:$16 sps:$4 sm:$0xff]   ;;  %v1708_v21 = vld [vmem:[%s2486_s18 + $0x88] ss:$16 sps:$4 sm:$0xff]  }
  0xda   : > { %701 = vmatpush1.bf16.msra.mxu0 %v1689_v8  ;;  %744 = vmatpush1.bf16.msra.mxu1 %v1690_v9  ;;  %v1709_v22 = vld [vmem:[%s2486_s18 + $0xa4] ss:$16 sps:$4 sm:$0xff]   ;;  %v1711_v23 = vld [vmem:[%s2486_s18 + $0xac] ss:$16 sps:$4 sm:$0xff]   ;;  %v1713_v24 = vld [vmem:[%s2486_s18 + $0xa0] ss:$16 sps:$4 sm:$0xff]  }
  0xdb   : > { %702 = vmatprep.subr.bf16.mxu0 %v1691_v10  ;;  %745 = vmatprep.subr.bf16.mxu1 %v1693_v11  ;;  %v1714_v25 = vld [vmem:[%s2486_s18 + $0xa8] ss:$16 sps:$4 sm:$0xff]   ;;  %v1715_v26 = vld [vmem:[%s2486_s18 + $0xc4] ss:$16 sps:$4 sm:$0xff]   ;;  %v1717_v27 = vld [vmem:[%s2486_s18 + $0xcc] ss:$16 sps:$4 sm:$0xff]  }
  0xdc   : > { %v1719_v28 = vld [vmem:[%s2486_s18 + $0xc0] ss:$16 sps:$4 sm:$0xff]   ;;  %v1720_v29 = vld [vmem:[%s2486_s18 + $0xc8] ss:$16 sps:$4 sm:$0xff]   ;;  %v1721_v30 = vld [vmem:[%s2486_s18 + $0xe4] ss:$16 sps:$4 sm:$0xff]  }
  0xdd   : > { %v1723_v31 = vld [vmem:[%s2486_s18 + $0xec] ss:$16 sps:$4 sm:$0xff]   ;;  %v1725_v32 = vld [vmem:[%s2486_s18 + $0xe0] ss:$16 sps:$4 sm:$0xff]   ;;  %v1726_v33 = vld [vmem:[%s2486_s18 + $0xe8] ss:$16 sps:$4 sm:$0xff]  }
  0xde   : > { %703 = vmatpush1.bf16.msra.mxu0 %v1695_v12  ;;  %746 = vmatpush1.bf16.msra.mxu1 %v1696_v13  ;;  %v1729_v34 = vld [vmem:[%s2492_s22 + $0x4] ss:$16 sps:$4 sm:$0xff]   ;;  %v1732_v35 = vld [vmem:[%s2492_s22 + $0xc] ss:$16 sps:$4 sm:$0xff]   ;;  %v1727_v36 = vld [vmem:[%s2492_s22] ss:$16 sps:$4 sm:$0xff]  }
  0xdf   : > { %704 = vmatprep.subr.bf16.mxu0 %v1697_v14  ;;  %747 = vmatprep.subr.bf16.mxu1 %v1699_v15  ;;  %v1733_v37 = vld [vmem:[%s382_s6] sm:$0xff]   ;;  %v492_v5 = vld [vmem:[#allocation2 + $0x10] sm:$0xff]  ;;  %v493_v7 = vld [vmem:[#allocation2 + $0x18] sm:$0xff]  ;;  %p1488_p1 = scmp.ne.s32.totalorder %s2763_s29, 1 }
  0xe0   : > { %v1730_v38 = vld [vmem:[%s2492_s22 + $0x8] ss:$16 sps:$4 sm:$0xff]   ;;  %v1736_v39 = vld [vmem:[%s2492_s22 + $0x24] ss:$16 sps:$4 sm:$0xff]   ;;  %v1739_v40 = vld [vmem:[%s2492_s22 + $0x2c] ss:$16 sps:$4 sm:$0xff]  }
  0xe1   : > { %v1734_v41 = vld [vmem:[%s2492_s22 + $0x20] ss:$16 sps:$4 sm:$0xff]   ;;  %v1737_v42 = vld [vmem:[%s2492_s22 + $0x28] ss:$16 sps:$4 sm:$0xff]   ;;  %v1742_v43 = vld [vmem:[%s2492_s22 + $0x44] ss:$16 sps:$4 sm:$0xff]  }
  0xe2   : > { %705 = vmatpush1.bf16.msra.mxu0 %v1701_v16  ;;  %748 = vmatpush1.bf16.msra.mxu1 %v1702_v17  ;;  %v1745_v44 = vld [vmem:[%s2492_s22 + $0x4c] ss:$16 sps:$4 sm:$0xff]   ;;  %v1740_v45 = vld [vmem:[%s2492_s22 + $0x40] ss:$16 sps:$4 sm:$0xff]   ;;  %v1743_v46 = vld [vmem:[%s2492_s22 + $0x48] ss:$16 sps:$4 sm:$0xff]  }
  0xe3   : > { %706 = vmatprep.subr.bf16.mxu0 %v1703_v18  ;;  %749 = vmatprep.subr.bf16.mxu1 %v1705_v19  ;;  %v1748_v47 = vld [vmem:[%s2492_s22 + $0x64] ss:$16 sps:$4 sm:$0xff]   ;;  %v1751_v48 = vld [vmem:[%s2492_s22 + $0x6c] ss:$16 sps:$4 sm:$0xff]   ;;  %v1746_v49 = vld [vmem:[%s2492_s22 + $0x60] ss:$16 sps:$4 sm:$0xff]  }
  0xe4   : > { %v1749_v50 = vld [vmem:[%s2492_s22 + $0x68] ss:$16 sps:$4 sm:$0xff]   ;;  %v1754_v51 = vld [vmem:[%s2492_s22 + $0x84] ss:$16 sps:$4 sm:$0xff]   ;;  %v1757_v52 = vld [vmem:[%s2492_s22 + $0x8c] ss:$16 sps:$4 sm:$0xff]  }
  0xe5   : > { %v1752_v53 = vld [vmem:[%s2492_s22 + $0x80] ss:$16 sps:$4 sm:$0xff]   ;;  %v1755_v54 = vld [vmem:[%s2492_s22 + $0x88] ss:$16 sps:$4 sm:$0xff]   ;;  %v1760_v55 = vld [vmem:[%s2492_s22 + $0xa4] ss:$16 sps:$4 sm:$0xff]  }
  0xe6   : > { %707 = vmatpush1.bf16.msra.mxu0 %v1707_v20  ;;  %750 = vmatpush1.bf16.msra.mxu1 %v1708_v21  ;;  %v1763_v56 = vld [vmem:[%s2492_s22 + $0xac] ss:$16 sps:$4 sm:$0xff]   ;;  %v1758_v57 = vld [vmem:[%s2492_s22 + $0xa0] ss:$16 sps:$4 sm:$0xff]   ;;  %v1761_v58 = vld [vmem:[%s2492_s22 + $0xa8] ss:$16 sps:$4 sm:$0xff]  }
  0xe7   : > { %708 = vmatprep.subr.bf16.mxu0 %v1709_v22  ;;  %751 = vmatprep.subr.bf16.mxu1 %v1711_v23  ;;  %v1766_v59 = vld [vmem:[%s2492_s22 + $0xc4] ss:$16 sps:$4 sm:$0xff]   ;;  %v1769_v60 = vld [vmem:[%s2492_s22 + $0xcc] ss:$16 sps:$4 sm:$0xff]   ;;  %v1764_v61 = vld [vmem:[%s2492_s22 + $0xc0] ss:$16 sps:$4 sm:$0xff]  }
  0xe8   : > { %v1767_v62 = vld [vmem:[%s2492_s22 + $0xc8] ss:$16 sps:$4 sm:$0xff]   ;;  %v1772_v63 = vld [vmem:[%s2492_s22 + $0xe4] ss:$16 sps:$4 sm:$0xff]   ;;  %v1775_v0 = vld [vmem:[%s2492_s22 + $0xec] ss:$16 sps:$4 sm:$0xff]  }
  0xe9   : > { %v1770_v1 = vld [vmem:[%s2492_s22 + $0xe0] ss:$16 sps:$4 sm:$0xff]   ;;  %v1773_v2 = vld [vmem:[%s2492_s22 + $0xe8] ss:$16 sps:$4 sm:$0xff]   ;;  %s1201_s16 = sld [smem:[#allocation3]] (!%p1488_p1)  ;;  %p1200_p3 = scmp.eq.s32.totalorder (!%p1488_p1), %s2043_s12, 0 }
  0xea   : > { %709 = vmatpush1.bf16.msra.mxu0 %v1713_v24  ;;  %752 = vmatpush1.bf16.msra.mxu1 %v1714_v25  ;;  %v490_v4 = vld [vmem:[#allocation2] sm:$0xff]  ;;  %v491_v6 = vld [vmem:[#allocation2 + $0x8] sm:$0xff]  ;;  %v496_v11 = vld [vmem:[#allocation2 + $0x30] sm:$0xff] }
  0xeb   : > { %710 = vmatprep.subr.bf16.mxu0 %v1715_v26  ;;  %753 = vmatprep.subr.bf16.mxu1 %v1717_v27  ;;  %v494_v10 = vld [vmem:[#allocation2 + $0x20] sm:$0xff]  ;;  %v495_v16 = vld [vmem:[#allocation2 + $0x28] sm:$0xff]  ;;  %v497_v17 = vld [vmem:[#allocation2 + $0x38] sm:$0xff] }
  0xee   : > { %711 = vmatpush1.bf16.msra.mxu0 %v1719_v28  ;;  %754 = vmatpush1.bf16.msra.mxu1 %v1720_v29  ;;  %v1124_v28 = vlaneseq (!%p1488_p1) }
  0xef   : > { %712 = vmatprep.subr.bf16.mxu0 %v1721_v30  ;;  %755 = vmatprep.subr.bf16.mxu1 %v1723_v31 }
  0xf0   : > { %v1125_v29 = vshrl.u32 (!%p1488_p1), %v1124_v28, 7 }
  0xf2   : > { %713 = vmatpush1.bf16.msra.mxu0 %v1725_v32  ;;  %756 = vmatpush1.bf16.msra.mxu1 %v1726_v33  ;;  %v1122_v32 = vld [vmem:[%s470_s1] sm:$0xf] (!%p1488_p1)  ;;  %v1126_v33 = vsub.s32 (!%p1488_p1), 0, %v1125_v29 }
  0xf3   : > { %1008 = vmatprep.subr.bf16.mxu0 %v1729_v34  ;;  %1051 = vmatprep.subr.bf16.mxu1 %v1732_v35  ;;  %v1130_v34 = vsub.s32 (!%p1488_p1), 1, %v1125_v29  ;;  %v1134_v35 = vsub.s32 (!%p1488_p1), 2, %v1125_v29 }
  0xf5   : > { %731 = vmatmul.mubr.bf16.vlgmr.msra.gmra.mrb[0].mxu0 %v1733_v37  ;;  %774 = vmatmul.mubr.bf16.vlgmr.msra.gmra.mrb[0].mxu1 %v1733_v37  ;;  %v1160_v37 = vld [vmem:[%s475_s13] sm:$0xf] (!%p1488_p1) }
  0xf6   : > { %1009 = vmatpush1.bf16.msra.mxu0 %v1727_v36  ;;  %1052 = vmatpush1.bf16.msra.mxu1 %v1730_v38  ;;  %v1138_v36 = vsub.s32 (!%p1488_p1), 3, %v1125_v29 }
  0xf7   : > { %1010 = vmatprep.subr.bf16.mxu0 %v1736_v39  ;;  %1053 = vmatprep.subr.bf16.mxu1 %v1739_v40 }
  0xf8   : > { %1040 = vmatprep.mubr.bf16.mxu0 %v2068_v3  ;;  %1083 = vmatprep.mubr.bf16.mxu1 %v2068_v3  ;;  %v1776_v3 = vld [vmem:[%s391_s17] sm:$0xff]  }
  0xfa   : > { %1011 = vmatpush1.bf16.msra.mxu0 %v1734_v41  ;;  %1054 = vmatpush1.bf16.msra.mxu1 %v1737_v42  ;;  %v1127_v41 = vrot.slane (!%p1488_p1), %v1122_v32, %v1126_v33  ;;  %v1131_v42 = vrot.slane (!%p1488_p1), %v1122_v32, %v1130_v34 }
  0xfb   : > { %1012 = vmatprep.subr.bf16.mxu0 %v1742_v43  ;;  %1055 = vmatprep.subr.bf16.mxu1 %v1745_v44  ;;  %v1135_v43 = vrot.slane (!%p1488_p1), %v1122_v32, %v1134_v35  ;;  %v1139_v44 = vrot.slane (!%p1488_p1), %v1122_v32, %v1138_v36 }
  0xfe   : > { %1013 = vmatpush1.bf16.msra.mxu0 %v1740_v45  ;;  %1056 = vmatpush1.bf16.msra.mxu1 %v1743_v46 }
  0xff   : > { %1014 = vmatprep.subr.bf16.mxu0 %v1748_v47  ;;  %1057 = vmatprep.subr.bf16.mxu1 %v1751_v48  ;;  %v1165_v48 = vrot.slane (!%p1488_p1), %v1160_v37, %v1126_v33 }
 0x102   : > { %1015 = vmatpush1.bf16.msra.mxu0 %v1746_v49  ;;  %1058 = vmatpush1.bf16.msra.mxu1 %v1749_v50  ;;  %v1169_v49 = vrot.slane (!%p1488_p1), %v1160_v37, %v1130_v34  ;;  %v1173_v50 = vrot.slane (!%p1488_p1), %v1160_v37, %v1134_v35 }
 0x103   : > { %1016 = vmatprep.subr.bf16.mxu0 %v1754_v51  ;;  %1059 = vmatprep.subr.bf16.mxu1 %v1757_v52  ;;  %v1177_v51 = vrot.slane (!%p1488_p1), %v1160_v37, %v1138_v36 }
 0x106   : > { %1017 = vmatpush1.bf16.msra.mxu0 %v1752_v53  ;;  %1060 = vmatpush1.bf16.msra.mxu1 %v1755_v54 }
 0x107   : > { %1018 = vmatprep.subr.bf16.mxu0 %v1760_v55  ;;  %1061 = vmatprep.subr.bf16.mxu1 %v1763_v56 }
 0x10a   : > { %1019 = vmatpush1.bf16.msra.mxu0 %v1758_v57  ;;  %1062 = vmatpush1.bf16.msra.mxu1 %v1761_v58 }
 0x10b   : > { %1020 = vmatprep.subr.bf16.mxu0 %v1766_v59  ;;  %1063 = vmatprep.subr.bf16.mxu1 %v1769_v60 }
 0x10e   : > { %1021 = vmatpush1.bf16.msra.mxu0 %v1764_v61  ;;  %1064 = vmatpush1.bf16.msra.mxu1 %v1767_v62 }
 0x10f   : > { %1022 = vmatprep.subr.bf16.mxu0 %v1772_v63  ;;  %1065 = vmatprep.subr.bf16.mxu1 %v1775_v0 }
 0x112   : > { %1023 = vmatpush1.bf16.msra.mxu0 %v1770_v1  ;;  %1066 = vmatpush1.bf16.msra.mxu1 %v1773_v2 }
 0x115   : > { %1041 = vmatmul.mubr.bf16.vlgmr.msra.gmra.mrb[0].mxu0 %v1776_v3  ;;  %1084 = vmatmul.mubr.bf16.vlgmr.msra.gmra.mrb[0].mxu1 %v1776_v3 }
 0x1e8   : > { %v1042_v8 = vpop.f32.mrb[0].mxu0  ;;  %v1085_v9 = vpop.f32.mrb[0].mxu1  ;;  %1113 = sbr.rel (%p1488_p1) target bundleno = 661 (0x295), region = 72 }
 0x1e9   : > { %v1497_v12 = vadd.f32 %v1042_v8, %v490_v4  ;;  %v1509_v13 = vadd.f32 %v1085_v9, %v492_v5  ;;  %v1044_v14 = vpop.f32.mrb[1].mxu0  ;;  %v1087_v15 = vpop.f32.mrb[1].mxu1 }
 0x1ea   : > { %v1500_v18 = vadd.f32 %v1044_v14, %v491_v6  ;;  %v1512_v19 = vadd.f32 %v1087_v15, %v493_v7  ;;  %v1046_v20 = vpop.f32.mrb[2].mxu0  ;;  %v1089_v21 = vpop.f32.mrb[2].mxu1 }
 0x1eb   : > { %1102 = vst [vmem:[#allocation2] sm:$0xff] %v1497_v12  ;;  %1104 = vst [vmem:[#allocation2 + $0x10] sm:$0xff] %v1509_v13  ;;  %v1503_v22 = vadd.f32 %v1046_v20, %v494_v10  ;;  %v1515_v23 = vadd.f32 %v1089_v21, %v496_v11  ;;  %v1048_v24 = vpop.f32.mrb[3].mxu0  ;;  %v1091_v25 = vpop.f32.mrb[3].mxu1 }
 0x1ec   : > { %1103 = vst [vmem:[#allocation2 + $0x8] sm:$0xff] %v1500_v18  ;;  %1105 = vst [vmem:[#allocation2 + $0x18] sm:$0xff] %v1512_v19  ;;  %v1506_v26 = vadd.f32 %v1048_v24, %v495_v16  ;;  %v1518_v27 = vadd.f32 %v1091_v25, %v497_v17 }
 0x1ed   : > { %1106 = vst [vmem:[#allocation2 + $0x20] sm:$0xff] %v1503_v22  ;;  %1108 = vst [vmem:[#allocation2 + $0x30] sm:$0xff] %v1515_v23 }
 0x1ee   : > { %1107 = vst [vmem:[#allocation2 + $0x28] sm:$0xff] %v1506_v26  ;;  %1109 = vst [vmem:[#allocation2 + $0x38] sm:$0xff] %v1518_v27 }
 0x1ef   : > { %s2802_s16 = smov (!%p1200_p3, %s1201_s16), 0.0 }
 0x1f0   : > { %v1203_v18 = vstv %s2802_s16 }
 0x1f2   : > { %v1114_v30 = vld [vmem:[#allocation2] sm:$0xff]  ;;  %v1116_v38 = vld [vmem:[#allocation2 + $0x10] sm:$0xff] }
 0x1f3   : > { %v1115_v31 = vld [vmem:[#allocation2 + $0x8] sm:$0xff]  ;;  %v1117_v39 = vld [vmem:[#allocation2 + $0x18] sm:$0xff]  ;;  %v1144_v52 = vadd.f32 %v1127_v41, %v1114_v30  ;;  %v1146_v54 = vadd.f32 %v1135_v43, %v1116_v38 }
 0x1f4   : > { %v1118_v40 = vld [vmem:[#allocation2 + $0x20] sm:$0xff]  ;;  %v1120_v46 = vld [vmem:[#allocation2 + $0x30] sm:$0xff]  ;;  %v1145_v53 = vadd.f32 %v1131_v42, %v1115_v31  ;;  %v1147_v55 = vadd.f32 %v1139_v44, %v1117_v39 }
 0x1f5   : > { %v1119_v45 = vld [vmem:[#allocation2 + $0x28] sm:$0xff]  ;;  %v1121_v47 = vld [vmem:[#allocation2 + $0x38] sm:$0xff]  ;;  %v1148_v56 = vadd.f32 %v1127_v41, %v1118_v40  ;;  %v1150_v58 = vadd.f32 %v1135_v43, %v1120_v46  ;;  %v1152_v60 = vmax.f32 %v1144_v52, 0.0  ;;  %v1154_v62 = vmax.f32 %v1146_v54, 0.0 }
 0x1f6   : > { %v1149_v57 = vadd.f32 %v1131_v42, %v1119_v45  ;;  %v1151_v59 = vadd.f32 %v1139_v44, %v1121_v47  ;;  %v1153_v61 = vmax.f32 %v1145_v53, 0.0  ;;  %v1155_v63 = vmax.f32 %v1147_v55, 0.0 }
 0x1f7   : > { %v1156_v0 = vmax.f32 %v1148_v56, 0.0  ;;  %v1158_v2 = vmax.f32 %v1150_v58, 0.0  ;;  %v1182_v3 = vmul.f32 %v1165_v48, %v1152_v60  ;;  %v1184_v5 = vmul.f32 %v1173_v50, %v1154_v62 }
 0x1f8   : > { %v1157_v1 = vmax.f32 %v1149_v57, 0.0  ;;  %v1183_v4 = vmul.f32 %v1169_v49, %v1153_v61  ;;  %v1159_v6 = vmax.f32 %v1151_v59, 0.0  ;;  %v1185_v10 = vmul.f32 %v1177_v51, %v1155_v63 }
 0x1f9   : > { %v1186_v7 = vmul.f32 %v1165_v48, %v1156_v0  ;;  %v1188_v9 = vmul.f32 %v1173_v50, %v1158_v2 }
 0x1fa   : > { %v1187_v8 = vmul.f32 %v1169_v49, %v1157_v1  ;;  %v1190_v11 = vadd.f32 %v1183_v4, %v1182_v3  ;;  %v1189_v14 = vmul.f32 %v1177_v51, %v1159_v6 }
 0x1fc   : > { %v1195_v12 = vadd.f32 %v1187_v8, %v1186_v7  ;;  %v1191_v13 = vadd.f32 %v1190_v11, %v1184_v5 }
 0x1fe   : > { %v1196_v15 = vadd.f32 %v1195_v12, %v1188_v9  ;;  %v1192_v16 = vadd.f32 %v1191_v13, %v1185_v10 }
 0x200   : > { %1193 = vadd.xlane.f32.xlu0 %v1192_v16  ;;  %v1197_v17 = vadd.f32 %v1196_v15, %v1189_v14 }
 0x204   : > { %1198 = vadd.xlane.f32.xlu0 %v1197_v17 }
 0x28d   : > { %v1194_v19 = vpop.xlane.xlu0 %1193 }
 0x28e   : > { %v1204_v20 = vadd.f32 %v1203_v18, %v1194_v19 }
 0x290   : > { %1206 = vst [vmem:[%s2512_s7] sm:$0xff] %v1204_v20 }
 0x291   : > { %v1199_v21 = vpop.xlane.xlu0 %1198 }
 0x292   : > { %v1205_v22 = vadd.f32 %v1203_v18, %v1199_v21 }
 0x294   : > { %1207 = vst [vmem:[%s2512_s7 + $0x8] sm:$0xff] %v1205_v22 }
 0x295 PF: > { %s2766_s22 = sld [smem:[#allocation27_spill]]  ;;  %s1490_s4 = sshll.u32 %s2043_s12, 7 }
 0x296   : > { %s2767_s28 = sld [smem:[#allocation34_spill]]  ;;  %s1221_s5 = sshll.u32 %s2512_s7, 4  ;;  %s2608_s5 = int_to_ptr.vmem [resolvable:$true] %s1221_s5 }
 0x297   : > { %s2612_s11 = scalar_lea.sflag [#allocation6], %s460_s24  ;;  %s1897_s21 = scalar_lea.vmem %s2608_s5, 256 }
 0x298   : > { %p1898_p13 = scmp.ne.s32.totalorder %s2608_s5, %s1897_s21  ;;  %s2069_s12 = smov [#allocation12]  }
 0x299   : > { %s1901_s13 = sshll.u32 %s2069_s12, 4  ;;  %s1902_s13 = int_to_ptr.vmem [resolvable:$false] %s1901_s13 }
 0x29a   : > { %s1903_s0 = scalar_lea.vmem %s1902_s13, 512  ;;  %p1904_p4 = scmp.lt.s32.totalorder %s2608_s5, %s1902_s13 }
 0x29b   : > { %p2769_p7 = scmp.ne.s32.totalorder %s2766_s22, 0  ;;  %p1905_p5 = scmp.lt.s32.totalorder %s1903_s0, %s1897_s21 }
 0x29c   : > { %s2768_s2 = smov %s2767_s28  ;;  %s2605_s1 = scalar_lea.hbm %s2767_s28, %s1490_s4 }
 0x29d   : > { %p1899_p12 = pnand %p1898_p13, %p2769_p7  ;;  %p1906_p2 = por %p1905_p5, %p1904_p4 }
 0x29f   : > { %p1900_p11 = pneg %p1899_p12 }
 0x2a1   : > { %p1907_p10 = pnand %p1906_p2, %p1900_p11 }
 0x2a3   : > { %1910 = shalt.err (!%p1907_p10)
}
 0x2a4   : > { %s1911_s24 = scalar_lea.hbm %s2605_s1, 256  ;;  %s1915_s6 = scalar_lea.hbm %s2768_s2, 512 }
 0x2a5   : > { %p1912_p9 = scmp.ne.s32.totalorder %s2605_s1, %s1911_s24  ;;  %p1916_p8 = scmp.lt.u32.totalorder %s2605_s1, %s2768_s2 }
 0x2a6   : > { %p1917_p1 = scmp.lt.u32.totalorder %s1915_s6, %s1911_s24  ;;  %p1919_p13 = scmp.lt.u32.totalorder %s1911_s24, %s2605_s1 }
 0x2a7   : > { %p1913_p0 = pnand %p1912_p9, %p2769_p7 }
 0x2a8   : > { %p1918_p3 = por %p1917_p1, %p1916_p8 }
 0x2a9   : > { %p1914_p6 = pneg %p1913_p0 }
 0x2aa   : > { %p1920_p12 = por %p1919_p13, %p1918_p3 }
 0x2ac   : > { %p1921_p11 = pnand %p1920_p12, %p1914_p6 }
 0x2ae   : > { %1924 = shalt.err (!%p1921_p11)
}
 0x2af   : > { %s2070_s23 = smov 128   ;;  %s2071_s20 = smov 256  }
 0x2b0   : > { %s2072_s18 = smov 8  }
 0x2b1   : > { %1535 = dma.vmem_to_hbm [thread:$0]  (%p2769_p7), %s2608_s5, 256, %s2605_s1, %s2612_s11, %s2070_s23, %s2071_s20, %s2072_s18  }
 0x2b2 PF: > { %s2770_s16 = sld [smem:[#allocation18_spill]]  ;;  %s2771_s4 = sld [smem:[#allocation28_spill]] }
 0x2b3   : > { %p1555_p4 = scmp.ge.s32.totalorder %s2055_s15, 2 }
 0x2b8   : > { %s1236_s25 = sand.u32 1, %s2770_s16   ;;  %p2772_p5 = scmp.ne.s32.totalorder %s2771_s4, 0 }
 0x2b9   : > { %s1237_s19 = scalar_lea.sflag [#allocation6], %s1236_s25 }
 0x2ba   : > { %p1551_p2 = pnand %p1555_p4, %p2772_p5 }
 0x2bc   : > { %1998 = dma.done.wait (!%p1551_p2), %s1237_s19, 256  }
 0x2bd   : > { %2000 = vsyncadd (!%p1551_p2), %s1237_s19, 4294967040  ;;  %s30_s15 = sadd.s32 1, %s2055_s15   ;;  %s2774_s22 = sld [smem:[#allocation19_spill]] }
 0x2be   : > { %p2641_p10 = scmp.ge.s32.totalorder %s30_s15, 6   ;;  %s2775_s1 = sld [smem:[#allocation26_spill]] }
 0x2bf   : > { %s2776_s5 = smov %s2355_s26  ;;  %s2777_s11 = sld [smem:[#allocation25_spill]] }
 0x2c0   : > { %s2778_s21 = sld [smem:[#allocation21_spill]]  ;;  %s2779_s12 = sld [smem:[#allocation22_spill]] }
 0x2c1   : > { %s2780_s13 = sld [smem:[#allocation23_spill]]  ;;  %s2781_s14 = sld [smem:[#allocation24_spill]] }
 0x2c2   : > { %s2783_s26 = smov %s2007_s27  ;;  %s2786_s29 = smov %s2019_s30 }
 0x2c3   : > { %s2784_s27 = smov %s2774_s22  ;;  %s2787_s30 = smov %s2023_s8 }
 0x2c4   : > { %s2785_s28 = smov %s2775_s1  ;;  %s2788_s8 = smov %s2776_s5 }
 0x2c5   : > { %s2789_s6 = smov %s2031_s9  ;;  %s2790_s9 = smov %s2035_s10 }
 0x2c6   : > { %s2791_s10 = smov %s2777_s11  ;;  %s2792_s11 = smov %s2778_s21 }
 0x2c7   :  { %29 = sbr.rel (!%p2641_p10) target bundleno = 22 (0x16), region = 144 }
 0x2ce   :  { %1242 = vsyncpa [#allocation5], 1 }
 0x2cf   :  { %1244 = vsyncpa [#allocation5 + $0x1], 1 }
 0x2d0   :  { %1245 = vsyncpa [#allocation8], 1 }
 0x2d1   :  { %1247 = vsyncpa [#allocation8 + $0x1], 1 }
 0x2d2   :  { %1248 = vsyncpa [#allocation11], 1 }
 0x2d3   :  { %1250 = vsyncpa [#allocation11 + $0x1], 1 }
 0x2d4   :  { %1251 = vsyncpa [#allocation6], 1 }
 0x2d5   :  { %1253 = vsyncpa [#allocation6 + $0x1], 1 }

</bundles_post_ra>
